<compile_context>
chip_gen: v6e
topology: v6e:2x2x1
jax: 0.10.0
libtpu: 0.0.40
codegen_flags: <defaults>
</compile_context>

<pallas_src>
import jax
import jax.numpy as jnp
from jax.experimental import pallas as pl
from jax.experimental.pallas import tpu as pltpu

_ALIGN = 8  # sublane-aligned stride between the avg-row-block and max-row-block


def _make_kernel(HW, T_HW, LANE_W, B_t, needs_mask):
    n_chunks = T_HW // LANE_W
    inv_hw = 1.0 / float(HW)

    def kernel(x_ref, w1_ref, b1_ref, w2_ref, b2_ref, w3_ref, b3_ref,
               o_ref, sum_acc, max_acc, pooled_acc):
        hw = pl.program_id(1)

        @pl.when(hw == 0)
        def _():
            sum_acc[...] = jnp.zeros(sum_acc.shape, sum_acc.dtype)
            max_acc[...] = jnp.full(max_acc.shape, -jnp.inf, max_acc.dtype)

        # --- single pass over the (B_t, C, T_HW) tile: lane-wide partials ---
        s = sum_acc[...]
        m = max_acc[...]
        for c in range(n_chunks):
            chunk = x_ref[:, :, c * LANE_W:(c + 1) * LANE_W]
            if needs_mask:  # static: only traced when HW % T_HW != 0
                pos = (hw * T_HW + c * LANE_W
                       + jax.lax.broadcasted_iota(jnp.int32, chunk.shape, 2))
                valid = pos < HW
                cs = jnp.where(valid, chunk, 0).astype(jnp.float32)
                cm = jnp.where(valid, chunk.astype(jnp.float32), -jnp.inf)
            else:
                cs = chunk.astype(jnp.float32)
                cm = cs
            s = s + cs
            m = jnp.maximum(m, cm)
        sum_acc[...] = s
        max_acc[...] = m

        # --- epilogue: one cross-lane reduce, fused MLP, sigmoid, store -----
        @pl.when(hw == pl.num_programs(1) - 1)
        def _():
            mean = jnp.sum(sum_acc[...], axis=-1) * inv_hw        # (B_t, C)
            mx = jnp.max(max_acc[...], axis=-1)                   # (B_t, C)

            # pack [mean ; max] at sublane-aligned offsets 0 and _ALIGN so the
            # shared MLP runs once on a single (2*_ALIGN, C) operand.
            pooled_acc[...] = jnp.zeros(pooled_acc.shape, pooled_acc.dtype)
            pooled_acc[0:B_t, :] = mean
            pooled_acc[_ALIGN:_ALIGN + B_t, :] = mx
            pooled = pooled_acc[...]

            h = jnp.dot(pooled, w1_ref[...],
                        preferred_element_type=jnp.float32) + b1_ref[...]
            h = jnp.maximum(h, 0.0)
            h = jnp.dot(h, w2_ref[...],
                        preferred_element_type=jnp.float32) + b2_ref[...]
            h = jnp.maximum(h, 0.0)
            y = jnp.dot(h, w3_ref[...],
                        preferred_element_type=jnp.float32) + b3_ref[...]

            out = jax.nn.sigmoid(y[0:B_t, :] + y[_ALIGN:_ALIGN + B_t, :])
            o_ref[...] = out.astype(o_ref.dtype)

    return kernel


def _pick_tiles(B, C, HW, itemsize, budget_bytes):
    # batch tile: at most _ALIGN rows and must divide B (keeps edges trivial)
    B_t = min(B, _ALIGN)
    while B % B_t:
        B_t -= 1
    if HW <= 128:
        return B_t, HW, HW           # full spatial axis, single chunk/step
    # spatial tile: multiple of 128 lanes sized so two in-flight x buffers fit
    # the VMEM budget (v7x-safe), capped at 2048 lanes per step.
    max_lanes = max(128, budget_bytes // (2 * B_t * C * itemsize))
    hw_pad = ((HW + 127) // 128) * 128
    T_HW = min(hw_pad, (max_lanes // 128) * 128, 2048)
    return B_t, T_HW, 128


def channel_attention_cnn(feature, params, *, vmem_budget_bytes=24 * 1024 * 1024):
    """feature: (B, C, H, W) NCHW float, same layout as the PyTorch module."""
    B, C, H, W = feature.shape
    HW = H * W
    x = feature.reshape(B, C, HW)
    w1, b1, w2, b2, w3, b3 = params
    hidden = w1.shape[1]
    out_dim = w3.shape[1]
    itemsize = feature.dtype.itemsize

    B_t, T_HW, LANE_W = _pick_tiles(B, C, HW, itemsize, vmem_budget_bytes)
    n_hw = pl.cdiv(HW, T_HW)
    needs_mask = (n_hw * T_HW) != HW
    grid = (B // B_t, n_hw)

    kernel = _make_kernel(HW, T_HW, LANE_W, B_t, needs_mask)

    def full_spec(arr):
        nd = arr.ndim
        return pl.BlockSpec(arr.shape, lambda b, h: (0,) * nd)

    weight_bytes = sum(int(p.size) * p.dtype.itemsize for p in params)
    # advisory: this call is bound by the single streaming read of `feature`.
    cost = pl.CostEstimate(
        flops=int(2 * B * C * HW
                  + 2 * (2 * B) * (C * hidden + hidden * hidden
                                   + hidden * out_dim)),
        transcendentals=int(B * out_dim),
        bytes_accessed=int(x.size * itemsize + weight_bytes
                           + B * out_dim * itemsize),
    )

    vmem_need = (2 * B_t * C * T_HW * itemsize       # double-buffered x tiles
                 + 2 * B_t * C * LANE_W * 4          # sum/max accumulators
                 + 2 * _ALIGN * C * 4                # pooled staging
                 + weight_bytes + 2 * B_t * out_dim * itemsize)
    vmem_limit = int(min(96 * 2**20, max(32 * 2**20, vmem_need + 8 * 2**20)))

    return pl.pallas_call(
        kernel,
        out_shape=jax.ShapeDtypeStruct((B, out_dim), feature.dtype),
        grid_spec=pltpu.PrefetchScalarGridSpec(
            num_scalar_prefetch=0,
            grid=grid,
            in_specs=[
                pl.BlockSpec((B_t, C, T_HW), lambda b, h: (b, 0, h)),
                full_spec(w1), full_spec(b1),
                full_spec(w2), full_spec(b2),
                full_spec(w3), full_spec(b3),
            ],
            out_specs=pl.BlockSpec((B_t, out_dim), lambda b, h: (b, 0)),
            scratch_shapes=[
                pltpu.VMEM((B_t, C, LANE_W), jnp.float32),   # running sum
                pltpu.VMEM((B_t, C, LANE_W), jnp.float32),   # running max
                pltpu.VMEM((2 * _ALIGN, C), jnp.float32),    # [mean ; max]
            ],
        ),
        compiler_params=pltpu.CompilerParams(
            dimension_semantics=("parallel", "arbitrary"),
            vmem_limit_bytes=vmem_limit,
        ),
        cost_estimate=cost,
    )(x, w1, b1, w2, b2, w3, b3)


def init_params(key, input_dim, output_dim):
    """Deterministic synthetic weights for MLP(input_dim, input_dim//2, output_dim, 3).

    Returned already transposed to (in, out) layout; biases are (1, out)."""
    hidden = input_dim // 2
    dims = [(input_dim, hidden), (hidden, hidden), (hidden, output_dim)]
    params = []
    for (fan_in, fan_out) in dims:
        key, kw, kb = jax.random.split(key, 3)
        bound = 1.0 / jnp.sqrt(fan_in)
        w = jax.random.uniform(kw, (fan_in, fan_out), jnp.float32, -bound, bound)
        b = jax.random.uniform(kb, (1, fan_out), jnp.float32, -bound, bound)
        params += [w, b]
    return tuple(params)


if __name__ == "__main__":
    B, C, H, W = 2, 4, 16, 16          # input_dim = C = 4
    input_dim, output_dim = C, 4       # hidden = input_dim // 2 = 2

    key = jax.random.PRNGKey(0)
    k_feat, k_param = jax.random.split(key)
    feature = jax.random.normal(k_feat, (B, C, H, W), jnp.float32)
    params = init_params(k_param, input_dim, output_dim)

    out = channel_attention_cnn(feature, params)
    out = jax.block_until_ready(out)

    # sanity: pure-JAX reference
    xr = feature.reshape(B, C, H * W)
    avg, mx = jnp.mean(xr, -1), jnp.max(xr, -1)
    w1, b1, w2, b2, w3, b3 = params
    mlp = lambda v: (jnp.maximum(jnp.maximum(v @ w1 + b1, 0) @ w2 + b2, 0) @ w3 + b3)
    ref = jax.nn.sigmoid(mlp(avg) + mlp(mx))
    assert jnp.allclose(out, ref, atol=1e-5), "mismatch vs reference"

    print("KERNEL_OK")
</pallas_src>

<mosaic_0001>
module attributes {stable_mosaic.version = 11 : i64} {
  func.func @kernel(%arg0: i32, %arg1: i32, %arg2: memref<2x4x256xf32, #tpu.memory_space<vmem>>, %arg3: memref<4x2xf32, #tpu.memory_space<vmem>>, %arg4: memref<1x2xf32, #tpu.memory_space<vmem>>, %arg5: memref<2x2xf32, #tpu.memory_space<vmem>>, %arg6: memref<1x2xf32, #tpu.memory_space<vmem>>, %arg7: memref<2x4xf32, #tpu.memory_space<vmem>>, %arg8: memref<1x4xf32, #tpu.memory_space<vmem>>, %arg9: memref<2x4xf32, #tpu.memory_space<vmem>>, %arg10: memref<2x4x128xf32, #tpu.memory_space<vmem>>, %arg11: memref<2x4x128xf32, #tpu.memory_space<vmem>>, %arg12: memref<16x4xf32, #tpu.memory_space<vmem>>) attributes {dimension_semantics = [#tpu.dimension_semantics<parallel>, #tpu.dimension_semantics<arbitrary>], iteration_bounds = array<i64: 1, 1>, scalar_prefetch = 0 : i64, scratch_operands = 3 : i64, tpu.core_type = #tpu.core_type<tc>, window_params = [{transform_indices = @transform_0, window_bounds = array<i64: 2, 4, 256>}, {pipeline_mode = #tpu.pipeline_mode<synchronous>, transform_indices = @transform_1, window_bounds = array<i64: 4, 2>}, {pipeline_mode = #tpu.pipeline_mode<synchronous>, transform_indices = @transform_2, window_bounds = array<i64: 1, 2>}, {pipeline_mode = #tpu.pipeline_mode<synchronous>, transform_indices = @transform_3, window_bounds = array<i64: 2, 2>}, {pipeline_mode = #tpu.pipeline_mode<synchronous>, transform_indices = @transform_4, window_bounds = array<i64: 1, 2>}, {pipeline_mode = #tpu.pipeline_mode<synchronous>, transform_indices = @transform_5, window_bounds = array<i64: 2, 4>}, {pipeline_mode = #tpu.pipeline_mode<synchronous>, transform_indices = @transform_6, window_bounds = array<i64: 1, 4>}, {transform_indices = @transform_7, window_bounds = array<i64: 2, 4>}]} {
    %c0_i32 = arith.constant 0 : i32
    %0 = arith.cmpi eq, %arg1, %c0_i32 : i32
    %1 = arith.extui %0 : i1 to i32
    %c0_i32_0 = arith.constant 0 : i32
    %2 = arith.cmpi ne, %1, %c0_i32_0 : i32
    scf.if %2 {
      %cst = arith.constant 0.000000e+00 : f32
      %16 = vector.broadcast %cst : f32 to vector<2x4x128xf32>
      %c0_19 = arith.constant 0 : index
      %c0_20 = arith.constant 0 : index
      %c0_21 = arith.constant 0 : index
      %17 = vector.load %arg10[%c0_19, %c0_20, %c0_21] : memref<2x4x128xf32, #tpu.memory_space<vmem>>, vector<2x4x128xf32>
      tpu.vector_store %arg10[%c0_19, %c0_20, %c0_21], %16 {strides = array<i32>} : memref<2x4x128xf32, #tpu.memory_space<vmem>>, vector<2x4x128xf32>,
      %cst_22 = arith.constant 0xFF800000 : f32
      %18 = vector.broadcast %cst_22 : f32 to vector<2x4x128xf32>
      %c0_23 = arith.constant 0 : index
      %c0_24 = arith.constant 0 : index
      %c0_25 = arith.constant 0 : index
      %19 = vector.load %arg11[%c0_23, %c0_24, %c0_25] : memref<2x4x128xf32, #tpu.memory_space<vmem>>, vector<2x4x128xf32>
      tpu.vector_store %arg11[%c0_23, %c0_24, %c0_25], %18 {strides = array<i32>} : memref<2x4x128xf32, #tpu.memory_space<vmem>>, vector<2x4x128xf32>,
    } else {
    }
    %c0 = arith.constant 0 : index
    %c0_1 = arith.constant 0 : index
    %c0_2 = arith.constant 0 : index
    %3 = vector.load %arg10[%c0, %c0_1, %c0_2] : memref<2x4x128xf32, #tpu.memory_space<vmem>>, vector<2x4x128xf32>
    %c0_3 = arith.constant 0 : index
    %c0_4 = arith.constant 0 : index
    %c0_5 = arith.constant 0 : index
    %4 = vector.load %arg11[%c0_3, %c0_4, %c0_5] : memref<2x4x128xf32, #tpu.memory_space<vmem>>, vector<2x4x128xf32>
    %c0_6 = arith.constant 0 : index
    %c0_7 = arith.constant 0 : index
    %c0_8 = arith.constant 0 : index
    %5 = vector.load %arg2[%c0_6, %c0_7, %c0_8] : memref<2x4x256xf32, #tpu.memory_space<vmem>>, vector<2x4x128xf32>
    %6 = arith.addf %3, %5 : vector<2x4x128xf32>
    %7 = arith.maximumf %4, %5 : vector<2x4x128xf32>
    %c0_9 = arith.constant 0 : index
    %c0_10 = arith.constant 0 : index
    %c128 = arith.constant 128 : index
    %8 = vector.load %arg2[%c0_9, %c0_10, %c128] : memref<2x4x256xf32, #tpu.memory_space<vmem>>, vector<2x4x128xf32>
    %9 = arith.addf %6, %8 : vector<2x4x128xf32>
    %10 = arith.maximumf %7, %8 : vector<2x4x128xf32>
    %c0_11 = arith.constant 0 : index
    %c0_12 = arith.constant 0 : index
    %c0_13 = arith.constant 0 : index
    %11 = vector.load %arg10[%c0_11, %c0_12, %c0_13] : memref<2x4x128xf32, #tpu.memory_space<vmem>>, vector<2x4x128xf32>
    tpu.vector_store %arg10[%c0_11, %c0_12, %c0_13], %9 {strides = array<i32>} : memref<2x4x128xf32, #tpu.memory_space<vmem>>, vector<2x4x128xf32>,
    %c0_14 = arith.constant 0 : index
    %c0_15 = arith.constant 0 : index
    %c0_16 = arith.constant 0 : index
    %12 = vector.load %arg11[%c0_14, %c0_15, %c0_16] : memref<2x4x128xf32, #tpu.memory_space<vmem>>, vector<2x4x128xf32>
    tpu.vector_store %arg11[%c0_14, %c0_15, %c0_16], %10 {strides = array<i32>} : memref<2x4x128xf32, #tpu.memory_space<vmem>>, vector<2x4x128xf32>,
    %c0_i32_17 = arith.constant 0 : i32
    %13 = arith.cmpi eq, %arg1, %c0_i32_17 : i32
    %14 = arith.extui %13 : i1 to i32
    %c0_i32_18 = arith.constant 0 : i32
    %15 = arith.cmpi ne, %14, %c0_i32_18 : i32
    scf.if %15 {
      %c0_19 = arith.constant 0 : index
      %c0_20 = arith.constant 0 : index
      %c0_21 = arith.constant 0 : index
      %16 = vector.load %arg10[%c0_19, %c0_20, %c0_21] : memref<2x4x128xf32, #tpu.memory_space<vmem>>, vector<2x4x128xf32>
      %cst = arith.constant dense<0.000000e+00> : vector<2x4xf32>
      %17 = vector.multi_reduction <add>, %16, %cst [2] : vector<2x4x128xf32> to vector<2x4xf32>
      %cst_22 = arith.constant 3.906250e-03 : f32
      %18 = vector.broadcast %cst_22 : f32 to vector<2x4xf32>
      %19 = arith.mulf %17, %18 : vector<2x4xf32>
      %c0_23 = arith.constant 0 : index
      %c0_24 = arith.constant 0 : index
      %c0_25 = arith.constant 0 : index
      %20 = vector.load %arg11[%c0_23, %c0_24, %c0_25] : memref<2x4x128xf32, #tpu.memory_space<vmem>>, vector<2x4x128xf32>
      %cst_26 = arith.constant dense<0xFF800000> : vector<2x4xf32>
      %21 = vector.multi_reduction <maximumf>, %20, %cst_26 [2] : vector<2x4x128xf32> to vector<2x4xf32>
      %cst_27 = arith.constant 0.000000e+00 : f32
      %22 = vector.broadcast %cst_27 : f32 to vector<16x4xf32>
      %c0_28 = arith.constant 0 : index
      %c0_29 = arith.constant 0 : index
      %23 = vector.load %arg12[%c0_28, %c0_29] : memref<16x4xf32, #tpu.memory_space<vmem>>, vector<16x4xf32>
      tpu.vector_store %arg12[%c0_28, %c0_29], %22 {strides = array<i32>} : memref<16x4xf32, #tpu.memory_space<vmem>>, vector<16x4xf32>,
      %c0_30 = arith.constant 0 : index
      %c0_31 = arith.constant 0 : index
      %24 = vector.load %arg12[%c0_30, %c0_31] : memref<16x4xf32, #tpu.memory_space<vmem>>, vector<2x4xf32>
      tpu.vector_store %arg12[%c0_30, %c0_31], %19 {strides = array<i32>} : memref<16x4xf32, #tpu.memory_space<vmem>>, vector<2x4xf32>,
      %c8 = arith.constant 8 : index
      %c0_32 = arith.constant 0 : index
      %25 = vector.load %arg12[%c8, %c0_32] : memref<16x4xf32, #tpu.memory_space<vmem>>, vector<2x4xf32>
      tpu.vector_store %arg12[%c8, %c0_32], %21 {strides = array<i32>} : memref<16x4xf32, #tpu.memory_space<vmem>>, vector<2x4xf32>,
      %c0_33 = arith.constant 0 : index
      %c0_34 = arith.constant 0 : index
      %26 = vector.load %arg12[%c0_33, %c0_34] : memref<16x4xf32, #tpu.memory_space<vmem>>, vector<16x4xf32>
      %c0_35 = arith.constant 0 : index
      %c0_36 = arith.constant 0 : index
      %27 = vector.load %arg3[%c0_35, %c0_36] : memref<4x2xf32, #tpu.memory_space<vmem>>, vector<4x2xf32>
      %cst_37 = arith.constant dense<0.000000e+00> : vector<16x2xf32>
      %28 = tpu.matmul %26, %27, %cst_37 {dimension_numbers = #tpu.dot_dimension_numbers<[1], [0], [0], [1], [0, 0, 1, 1], [], []>} : vector<16x4xf32>, vector<4x2xf32>, vector<16x2xf32> -> vector<16x2xf32>
      %c0_38 = arith.constant 0 : index
      %c0_39 = arith.constant 0 : index
      %29 = vector.load %arg4[%c0_38, %c0_39] : memref<1x2xf32, #tpu.memory_space<vmem>>, vector<1x2xf32>
      %30 = vector.broadcast %29 : vector<1x2xf32> to vector<16x2xf32>
      %31 = arith.addf %28, %30 : vector<16x2xf32>
      %cst_40 = arith.constant 0.000000e+00 : f32
      %32 = vector.broadcast %cst_40 : f32 to vector<16x2xf32>
      %33 = arith.maximumf %31, %32 : vector<16x2xf32>
      %c0_41 = arith.constant 0 : index
      %c0_42 = arith.constant 0 : index
      %34 = vector.load %arg5[%c0_41, %c0_42] : memref<2x2xf32, #tpu.memory_space<vmem>>, vector<2x2xf32>
      %cst_43 = arith.constant dense<0.000000e+00> : vector<16x2xf32>
      %35 = tpu.matmul %33, %34, %cst_43 {dimension_numbers = #tpu.dot_dimension_numbers<[1], [0], [0], [1], [0, 0, 1, 1], [], []>} : vector<16x2xf32>, vector<2x2xf32>, vector<16x2xf32> -> vector<16x2xf32>
      %c0_44 = arith.constant 0 : index
      %c0_45 = arith.constant 0 : index
      %36 = vector.load %arg6[%c0_44, %c0_45] : memref<1x2xf32, #tpu.memory_space<vmem>>, vector<1x2xf32>
      %37 = vector.broadcast %36 : vector<1x2xf32> to vector<16x2xf32>
      %38 = arith.addf %35, %37 : vector<16x2xf32>
      %cst_46 = arith.constant 0.000000e+00 : f32
      %39 = vector.broadcast %cst_46 : f32 to vector<16x2xf32>
      %40 = arith.maximumf %38, %39 : vector<16x2xf32>
      %c0_47 = arith.constant 0 : index
      %c0_48 = arith.constant 0 : index
      %41 = vector.load %arg7[%c0_47, %c0_48] : memref<2x4xf32, #tpu.memory_space<vmem>>, vector<2x4xf32>
      %cst_49 = arith.constant dense<0.000000e+00> : vector<16x4xf32>
      %42 = tpu.matmul %40, %41, %cst_49 {dimension_numbers = #tpu.dot_dimension_numbers<[1], [0], [0], [1], [0, 0, 1, 1], [], []>} : vector<16x2xf32>, vector<2x4xf32>, vector<16x4xf32> -> vector<16x4xf32>
      %c0_50 = arith.constant 0 : index
      %c0_51 = arith.constant 0 : index
      %43 = vector.load %arg8[%c0_50, %c0_51] : memref<1x4xf32, #tpu.memory_space<vmem>>, vector<1x4xf32>
      %44 = vector.broadcast %43 : vector<1x4xf32> to vector<16x4xf32>
      %45 = arith.addf %42, %44 : vector<16x4xf32>
      %46 = vector.extract_strided_slice %45 {offsets = [0, 0], sizes = [2, 4], strides = [1, 1]} : vector<16x4xf32> to vector<2x4xf32>
      %47 = vector.extract_strided_slice %45 {offsets = [8, 0], sizes = [2, 4], strides = [1, 1]} : vector<16x4xf32> to vector<2x4xf32>
      %48 = arith.addf %46, %47 : vector<2x4xf32>
      %49 = arith.negf %48 : vector<2x4xf32>
      %50 = math.exp %49 : vector<2x4xf32>
      %cst_52 = arith.constant 1.000000e+00 : f32
      %51 = vector.broadcast %cst_52 : f32 to vector<2x4xf32>
      %52 = arith.addf %51, %50 : vector<2x4xf32>
      %53 = arith.divf %51, %52 : vector<2x4xf32>
      %c0_53 = arith.constant 0 : index
      %c0_54 = arith.constant 0 : index
      %54 = vector.load %arg9[%c0_53, %c0_54] : memref<2x4xf32, #tpu.memory_space<vmem>>, vector<2x4xf32>
      tpu.vector_store %arg9[%c0_53, %c0_54], %53 {strides = array<i32>} : memref<2x4xf32, #tpu.memory_space<vmem>>, vector<2x4xf32>,
    } else {
    }
    return
  }
  func.func @transform_0(%arg0: i32, %arg1: i32) -> (i32, i32, i32) {
    %c0_i32 = arith.constant 0 : i32
    %c0_i32_0 = arith.constant 0 : i32
    return %arg0, %c0_i32, %arg1 : i32, i32, i32
  }
  func.func @transform_1(%arg0: i32, %arg1: i32) -> (i32, i32) {
    %c0_i32 = arith.constant 0 : i32
    %c0_i32_0 = arith.constant 0 : i32
    %c0_i32_1 = arith.constant 0 : i32
    return %c0_i32, %c0_i32_0 : i32, i32
  }
  func.func @transform_2(%arg0: i32, %arg1: i32) -> (i32, i32) {
    %c0_i32 = arith.constant 0 : i32
    %c0_i32_0 = arith.constant 0 : i32
    %c0_i32_1 = arith.constant 0 : i32
    return %c0_i32, %c0_i32_0 : i32, i32
  }
  func.func @transform_3(%arg0: i32, %arg1: i32) -> (i32, i32) {
    %c0_i32 = arith.constant 0 : i32
    %c0_i32_0 = arith.constant 0 : i32
    %c0_i32_1 = arith.constant 0 : i32
    return %c0_i32, %c0_i32_0 : i32, i32
  }
  func.func @transform_4(%arg0: i32, %arg1: i32) -> (i32, i32) {
    %c0_i32 = arith.constant 0 : i32
    %c0_i32_0 = arith.constant 0 : i32
    %c0_i32_1 = arith.constant 0 : i32
    return %c0_i32, %c0_i32_0 : i32, i32
  }
  func.func @transform_5(%arg0: i32, %arg1: i32) -> (i32, i32) {
    %c0_i32 = arith.constant 0 : i32
    %c0_i32_0 = arith.constant 0 : i32
    %c0_i32_1 = arith.constant 0 : i32
    return %c0_i32, %c0_i32_0 : i32, i32
  }
  func.func @transform_6(%arg0: i32, %arg1: i32) -> (i32, i32) {
    %c0_i32 = arith.constant 0 : i32
    %c0_i32_0 = arith.constant 0 : i32
    %c0_i32_1 = arith.constant 0 : i32
    return %c0_i32, %c0_i32_0 : i32, i32
  }
  func.func @transform_7(%arg0: i32, %arg1: i32) -> (i32, i32) {
    %c0_i32 = arith.constant 0 : i32
    %c0_i32_0 = arith.constant 0 : i32
    return %arg0, %c0_i32 : i32, i32
  }
}

</mosaic_0001>

<bundles_post_ra>
// kernel: tpu_custom_call.1
= control target key start
LH: loop header
LB: loop body
LE: loop exit
PB: predicated region body
PF: predicated region fallthrough
CT: control target
= control target key end

     0   :  { %12 = vsyncpa [#allocation6], 0  ;;  %s609_s0 = inlined_call_operand.hbm [shape: f32[2,4,256], index: 0, kind: input, shape index: {}]   ;;  %s610_s1 = inlined_call_operand.vmem [shape: f32[4,2], index: 1, kind: input, shape index: {}]   ;;  %s611_s2 = inlined_call_operand.vmem [shape: f32[1,2], index: 2, kind: input, shape index: {}]   ;;  %s612_s3 = inlined_call_operand.vmem [shape: f32[2,2], index: 3, kind: input, shape index: {}]   ;;  %s613_s4 = inlined_call_operand.vmem [shape: f32[1,2], index: 4, kind: input, shape index: {}]   ;;  %s614_s5 = inlined_call_operand.vmem [shape: f32[2,4], index: 5, kind: input, shape index: {}]   ;;  %s615_s6 = inlined_call_operand.vmem [shape: f32[1,4], index: 6, kind: input, shape index: {}]   ;;  %s616_s7 = inlined_call_operand.hbm [shape: f32[2,4], index: 7, kind: output, shape index: {}]  }
   0x1   :  { %13 = vsyncpa [#allocation7], 0  ;;  %s522_s24 = smov [#allocation5]  }
   0x2   :  { %s19_s25 = sshll.u32 %s522_s24, 4  ;;  %s20_s25 = int_to_ptr.vmem [resolvable:$true] %s19_s25 }
   0x3   :  { %s486_s26 = scalar_lea.vmem %s20_s25, 256  ;;  %p491_p1 = scmp.lt.s32.totalorder %s20_s25, %s20_s25 }
   0x4   :  { %p487_p0 = scmp.ne.s32.totalorder %s20_s25, %s486_s26  ;;  %p492_p2 = scmp.lt.s32.totalorder %s486_s26, %s486_s26 }
   0x6   :  { %p493_p3 = por %p492_p2, %p491_p1 }
   0x8   :  { %p494_p4 = pnand %p493_p3, %p487_p0 }
   0xa   :  { %497 = shalt.err (!%p494_p4)
}
   0xb   :  { %s523_s27 = smov 128   ;;  %s524_s28 = smov 8  }
   0xc   :  { %25 = dma.hbm_to_vmem [thread:$0]  %s609_s0, 256, %s20_s25, [#allocation6], %s523_s27, %s523_s27, %s524_s28  }
   0xd   :  { %518 = dma.done.wait [#allocation6], 256  }
   0xe   :  { %519 = vsyncadd [#allocation6], 4294967040  ;;  %v525_v0 = vmov -inf   ;;  %v526_v1 = vmov 0.0   ;;  %v53_v2 = vld [vmem:[#allocation5] sm:$0xf]  ;;  %v96_v27 = vlaneseq }
   0xf   :  { %47 = vst [vmem:[#allocation3] sm:$0xf] %v525_v0  ;;  %48 = vst [vmem:[#allocation3 + $0x4] sm:$0xf] %v525_v0  ;;  %v59_v3 = vld [vmem:[#allocation5 + $0x4] sm:$0xf] }
  0x10   :  { %45 = vst [vmem:[#allocation2] sm:$0xf] %v526_v1  ;;  %46 = vst [vmem:[#allocation2 + $0x4] sm:$0xf] %v526_v1  ;;  %v54_v4 = vld [vmem:[#allocation5 + $0x8] sm:$0xf] }
  0x11   :  { %v60_v11 = vld [vmem:[#allocation5 + $0xc] sm:$0xf]  ;;  %vm74_vm0 = vcmask 1043456   ;;  %vm91_vm1 = vcmask 31744   ;;  %v126_v26 = vld [vmem:[%s610_s1] sm:$0xf] }
  0x12   :  { %92 = vst.msk [vmem:[#allocation4] sm:$0xff] %vm91_vm1, %v526_v1  ;;  %93 = vst.msk [vmem:[#allocation4 + $0x8] sm:$0xff] %vm91_vm1, %v526_v1  ;;  %453 = vmatprep.subr.msk.mxu0 %vm74_vm0, %v126_v26  ;;  %v97_v28 = vand.u32 127, %v96_v27  ;;  %v99_v29 = vshrl.u32 %v96_v27, 7  ;;  %vm106_vm2 = vcmask 1041409   ;;  %vm109_vm3 = vcmask 25600  }
  0x13   :  { %454 = vmatpush3.msk.msra.mxu0 %vm74_vm0, %v126_v26  ;;  %v220_v45 = vld [vmem:[%s612_s3] sm:$0x3]  ;;  %vm235_vm4 = vcmask 1041408   ;;  %vm228_vm5 = vcmask 15360  }
  0x14   :  { %v100_v30 = vsub.s32 %v97_v28, %v99_v29  ;;  %458 = vmatprep.subr.msk.mxu1 %vm235_vm4, %v220_v45  ;;  %v431_v46 = vld [vmem:[%s611_s2] ss:$0 sm:$0xff] }
  0x15   :  { %459 = vmatpush3.msk.msra.mxu1 %vm235_vm4, %v220_v45  ;;  %v316_v53 = vld [vmem:[%s614_s5] sm:$0x3] }
  0x16   :  { %v51_v5 = vld [vmem:[#allocation3] sm:$0xf]  ;;  %v52_v7 = vld [vmem:[#allocation3 + $0x4] sm:$0xf]  ;;  %463 = vmatprep.subr.msk.mxu0 %vm235_vm4, %v316_v53  ;;  %v435_v54 = vld [vmem:[%s613_s4] ss:$0 sm:$0xff] }
  0x17   :  { %v49_v6 = vld [vmem:[#allocation2] sm:$0xf]  ;;  %v57_v8 = vmax.f32 %v51_v5, %v53_v2  ;;  %v58_v10 = vmax.f32 %v52_v7, %v54_v4  ;;  %v50_v12 = vld [vmem:[#allocation2 + $0x4] sm:$0xf]  ;;  %s527_s4 = smov [#allocation8]  }
  0x18   :  { %v55_v9 = vadd.f32 %v53_v2, %v49_v6  ;;  %v56_v13 = vadd.f32 %v54_v4, %v50_v12  ;;  %v439_v62 = vld [vmem:[%s615_s6] ss:$0 sm:$0xff]  ;;  %s422_s5 = sshll.u32 %s527_s4, 4  ;;  %s423_s5 = int_to_ptr.vmem [resolvable:$true] %s422_s5 }
  0x19   :  { %v63_v14 = vmax.f32 %v57_v8, %v59_v3  ;;  %v64_v16 = vmax.f32 %v58_v10, %v60_v11  ;;  %s498_s16 = scalar_lea.vmem %s423_s5, 32  ;;  %p503_p6 = scmp.lt.s32.totalorder %s423_s5, %s423_s5 }
  0x1a   :  { %v61_v15 = vadd.f32 %v59_v3, %v55_v9  ;;  %v62_v17 = vadd.f32 %v60_v11, %v56_v13  ;;  %p499_p5 = scmp.ne.s32.totalorder %s423_s5, %s498_s16  ;;  %p504_p7 = scmp.lt.s32.totalorder %s498_s16, %s498_s16 }
  0x1b   :  { %67 = vst [vmem:[#allocation3] sm:$0xf] %v63_v14  ;;  %68 = vst [vmem:[#allocation3 + $0x4] sm:$0xf] %v64_v16 }
  0x1c   :  { %65 = vst [vmem:[#allocation2] sm:$0xf] %v61_v15  ;;  %66 = vst [vmem:[#allocation2 + $0x4] sm:$0xf] %v62_v17  ;;  %p505_p8 = por %p504_p7, %p503_p6 }
  0x1e   :  { %p506_p9 = pnand %p505_p8, %p499_p5 }
  0x22   :  { %v83_v18 = vld [vmem:[#allocation3] sm:$0xf]  ;;  %v84_v20 = vld [vmem:[#allocation3 + $0x4] sm:$0xf] }
  0x23   :  { %v72_v19 = vld [vmem:[#allocation2] sm:$0xf]  ;;  %v85_v21 = vsel %vm74_vm0, %v83_v18, -inf  ;;  %v73_v23 = vld [vmem:[#allocation2 + $0x4] sm:$0xf]  ;;  %v88_v24 = vsel %vm74_vm0, %v84_v20, -inf }
  0x24   :  { %v75_v22 = vsel %vm74_vm0, %v72_v19, 0.0  ;;  %86 = vmax.xlane.f32.xlu1 %v85_v21  ;;  %v78_v25 = vsel %vm74_vm0, %v73_v23, 0.0 }
  0x25   :  { %76 = vadd.xlane.f32.xlu0 %v75_v22 }
  0x28   :  { %89 = vmax.xlane.f32.xlu1 %v88_v24 }
  0x29   :  { %79 = vadd.xlane.f32.xlu0 %v78_v25 }
  0xad   :  { %v87_v31 = vpop.xlane.xlu1 %86 }
  0xae   :  { %v77_v32 = vpop.xlane.xlu0 %76  ;;  %v116_v33 = vrot.slane %v87_v31, %v100_v30 }
  0xaf   :  { %v81_v34 = vmul.f32 0.00390625, %v77_v32 }
  0xb1   :  { %v90_v35 = vpop.xlane.xlu1 %89  ;;  %v101_v39 = vrot.slane %v81_v34, %v100_v30 }
  0xb2   :  { %v80_v36 = vpop.xlane.xlu0 %79  ;;  %v120_v37 = vrot.slane %v90_v35, %v100_v30 }
  0xb3   :  { %v82_v38 = vmul.f32 0.00390625, %v80_v36 }
  0xb4   :  { %v121_v40 = vsel %vm106_vm2, %v120_v37, %v116_v33 }
  0xb5   :  { %v105_v41 = vrot.slane %v82_v38, %v100_v30  ;;  %123 = vst.msk [vmem:[#allocation4 + $0x8] sm:$0x3] %vm109_vm3, %v121_v40 }
  0xb7   :  { %v107_v42 = vsel %vm106_vm2, %v105_v41, %v101_v39 }
  0xb8   :  { %110 = vst.msk [vmem:[#allocation4] sm:$0x3] %vm109_vm3, %v107_v42 }
  0xbc   :  { %v125_v44 = vld [vmem:[#allocation4 + $0x8] sm:$0xff] }
  0xbf   :  { %v124_v43 = vld [vmem:[#allocation4] sm:$0xff] }
  0xc0   :  { %455 = vmatprep.mubr.msk.f32.mxu0 %vm91_vm1, %v124_v43 }
  0xc1   :  { %456 = vmatmul.mubr.msk.f32.vlgmr.msra.gmra.mxu0 %vm91_vm1, %v125_v44 }
  0xc2   :  { %464 = vmatpush3.msk.msra.mxu0 %vm235_vm4, %v316_v53 }
 0x181   :  { %v457_v47 = vpop.f32.mrf.mxu0 }
 0x182   :  { %v215_v48 = vadd.f32 %v457_v47, %v431_v46 }
 0x183   :  { %v209_v49 = vpop.f32.mrf.mxu0 }
 0x184   :  { %v210_v50 = vadd.f32 %v431_v46, %v209_v49  ;;  %v219_v52 = vmax.f32 %v215_v48, 0.0 }
 0x186   :  { %v218_v51 = vmax.f32 %v210_v50, 0.0 }
 0x188   :  { %460 = vmatprep.mubr.msk.f32.mxu1 %vm228_vm5, %v218_v51 }
 0x189   :  { %461 = vmatmul.mubr.msk.f32.vlgmr.msra.gmra.mxu1 %vm228_vm5, %v219_v52 }
 0x249   :  { %v462_v55 = vpop.f32.mrf.mxu1 }
 0x24a   :  { %v311_v56 = vadd.f32 %v462_v55, %v435_v54 }
 0x24b   :  { %v305_v57 = vpop.f32.mrf.mxu1 }
 0x24c   :  { %v306_v58 = vadd.f32 %v435_v54, %v305_v57  ;;  %v315_v60 = vmax.f32 %v311_v56, 0.0 }
 0x24e   :  { %v314_v59 = vmax.f32 %v306_v58, 0.0 }
 0x250   :  { %465 = vmatprep.mubr.msk.f32.mxu0 %vm228_vm5, %v314_v59 }
 0x251   :  { %466 = vmatmul.mubr.msk.f32.vlgmr.msra.gmra.mxu0 %vm228_vm5, %v315_v60 }
 0x311   :  { %v467_v61 = vpop.f32.mrf.mxu0 }
 0x312   :  { %v405_v0 = vadd.f32 %v467_v61, %v439_v62 }
 0x313   :  { %v399_v63 = vpop.f32.mrf.mxu0 }
 0x314   :  { %v400_v1 = vadd.f32 %v439_v62, %v399_v63 }
 0x316   :  { %v408_v2 = vadd.f32 %v405_v0, %v400_v1 }
 0x318   :  { %v443_v3 = vmul.f32 -1.442695, %v408_v2 }
 0x31a   :  { %474 = vpow2.f32 %v443_v3 }
 0x327   :  { %v475_v4 = vpop.eup %474 }
 0x328   :  { %v412_v5 = vadd.f32 1.0, %v475_v4 }
 0x32a   :  { %476 = vrcp.f32 %v412_v5 }
 0x337   :  { %v477_v6 = vpop.eup %476 }
 0x338   :  { %415 = vst.msk [vmem:[#allocation8] sm:$0x3] %vm109_vm3, %v477_v6 }
 0x339   :  { %509 = shalt.err (!%p506_p9)
}
 0x33a   :  { %425 = dma.vmem_to_hbm [thread:$0]  %s423_s5, 32, %s616_s7, [#allocation7]  }
 0x33b   :  { %520 = dma.done.wait [#allocation7], 32  }
 0x33c   :  { %521 = vsyncadd [#allocation7], 4294967264 }
 0x33d   :  { %429 = vsyncpa [#allocation6], 1 }
 0x33e   :  { %430 = vsyncpa [#allocation7], 1 }

</bundles_post_ra>
